<compile_context>
chip_gen: v7x
topology: tpu7x:2x2x1
jax: 0.10.0
libtpu: 0.0.40
codegen_flags: <defaults>
</compile_context>

<pallas_src>
import functools

import jax
import jax.numpy as jnp
from jax import lax
from jax.experimental import pallas as pl
from jax.experimental.pallas import tpu as pltpu


def _round_up(x: int, m: int) -> int:
    return (x + m - 1) // m * m


# --- chip-aware budget (query once at import; conservative fallback) ---------
def _query_vmem_capacity() -> int:
    try:
        return int(pltpu.get_tpu_info().vmem_capacity_bytes)
    except Exception:
        return 64 * 1024 * 1024   # conservative (v7x-sized) fallback


_VMEM_CAP = _query_vmem_capacity()
# Bigger node tile on 128 MiB parts (v5e/v6e), keep 512 on 64 MiB parts (v7x).
_TN_CAP = 1024 if _VMEM_CAP >= 100 * 1024 * 1024 else 512


def _graph_cls_kernel(batch_ref, x_ref, w1_ref, b1_ref, w2_ref, b2_ref,
                      o_ref, pooled_ref, gid_ref):
    pid = pl.program_id(0)

    # First node block: zero the pooled accumulator and build the graph-id
    # iota once (it is grid-invariant; regenerating it each step is VPU work).
    @pl.when(pid == 0)
    def _():
        pooled_ref[...] = jnp.zeros_like(pooled_ref)
        gid_ref[...] = lax.broadcasted_iota(jnp.int32, gid_ref.shape, 0)

    # linear1 + relu on this node tile (MXU matmul, f32 accumulation).
    x = x_ref[...]                                                 # [TN, D_pad]
    h = jnp.dot(x, w1_ref[...], preferred_element_type=jnp.float32)
    h = jnp.maximum(h + b1_ref[...], 0.0)                          # [TN, H_pad] f32

    # global_add_pool partial:  pooled[g] += sum_{n in tile: batch[n]==g} h[n]
    # Mask is [G_pad, TN] so the contraction is native MXU form (no transpose).
    # Padded nodes carry batch id -1 and never match any graph row.
    batch = batch_ref[...]                                         # [1, TN] i32
    mask = (gid_ref[...] == batch).astype(x.dtype)                 # [G_pad, TN]
    pooled_ref[...] += jnp.dot(mask, h.astype(x.dtype),
                               preferred_element_type=jnp.float32)

    # linear2 on the finished pooled accumulator, single lane-dense store.
    @pl.when(pid == pl.num_programs(0) - 1)
    def _():
        o_ref[...] = (
            jnp.dot(pooled_ref[...], w2_ref[...],
                    preferred_element_type=jnp.float32)
            + b2_ref[...]
        )


@functools.partial(jax.jit, static_argnames=("num_graphs", "use_bf16"))
def graph_classification_output(inputs, batch, w1, b1, w2, b2, num_graphs,
                                use_bf16=False):
    """inputs: [N, D] f32, batch: [N] int32, w1: [D, H], b1: [H], w2: [H, C], b2: [C]."""
    n_nodes, d = inputs.shape
    h_dim = w1.shape[1]
    c = w2.shape[1]

    compute_dtype = jnp.bfloat16 if use_bf16 else jnp.float32
    bx = 2 if use_bf16 else 4

    # --- pad to TPU-native shapes -------------------------------------------
    tn = min(_TN_CAP, _round_up(n_nodes, 128))    # node tile (sublane axis)
    n_pad = _round_up(n_nodes, tn)
    d_pad = _round_up(d, 128)
    h_pad = _round_up(h_dim, 128)
    c_pad = _round_up(c, 128)
    g_pad = _round_up(num_graphs, 8)

    x_p = jnp.pad(inputs.astype(jnp.float32),
                  ((0, n_pad - n_nodes), (0, d_pad - d))).astype(compute_dtype)
    # Lane-dense (1, N) batch-id row; padded nodes -> -1 (match nothing).
    batch_p = jnp.pad(batch.astype(jnp.int32), (0, n_pad - n_nodes),
                      constant_values=-1).reshape(1, n_pad)
    w1_p = jnp.pad(w1.astype(jnp.float32),
                   ((0, d_pad - d), (0, h_pad - h_dim))).astype(compute_dtype)
    b1_p = jnp.pad(b1.astype(jnp.float32), (0, h_pad - h_dim)).reshape(1, h_pad)
    w2_p = jnp.pad(w2.astype(jnp.float32), ((0, h_pad - h_dim), (0, c_pad - c)))
    b2_p = jnp.pad(b2.astype(jnp.float32), (0, c_pad - c)).reshape(1, c_pad)

    n_blocks = n_pad // tn

    # --- VMEM budget: size the limit from the real buffers (+30% margin) ----
    vmem_need = (
        2 * tn * d_pad * bx            # x tile, double-buffered
        + 2 * 8 * tn * 4               # batch-id row (sublane-padded), 2 bufs
        + d_pad * h_pad * bx           # W1 (single-buffered)
        + h_pad * c_pad * 4            # W2 (single-buffered)
        + 8 * h_pad * 4 + 8 * c_pad * 4  # b1, b2 (single-buffered)
        + g_pad * h_pad * 4            # pooled accumulator scratch
        + g_pad * tn * 4               # hoisted graph-id iota scratch
        + 2 * g_pad * c_pad * 4        # output block (double-buffered)
    )
    vmem_limit = int(vmem_need * 1.3) + (1 << 20)
    vmem_limit = max(vmem_limit, 16 * 1024 * 1024)
    vmem_limit = min(vmem_limit, int(_VMEM_CAP * 0.85))

    # Advisory cost estimate for the XLA scheduler.
    flops = (2 * n_pad * d_pad * h_pad          # linear1
             + 2 * n_pad * g_pad * h_pad        # one-hot pooling matmul
             + 2 * g_pad * h_pad * c_pad)       # linear2
    bytes_accessed = (bx * (n_pad * d_pad + d_pad * h_pad)   # x + W1
                      + 4 * (n_pad                            # batch ids
                             + h_pad + h_pad * c_pad + c_pad  # b1 + W2 + b2
                             + g_pad * c_pad))                # out
    cost = pl.CostEstimate(flops=flops, transcendentals=0,
                           bytes_accessed=bytes_accessed)

    # Grid-invariant operands: DMA'd once, so single-buffer them (saves VMEM).
    single_buf = pl.Buffered(1)

    out_padded = pl.pallas_call(
        _graph_cls_kernel,
        out_shape=jax.ShapeDtypeStruct((g_pad, c_pad), jnp.float32),
        grid_spec=pltpu.PrefetchScalarGridSpec(
            num_scalar_prefetch=0,
            grid=(n_blocks,),
            in_specs=[
                pl.BlockSpec((1, tn), lambda i: (0, i)),         # batch ids (lane-dense)
                pl.BlockSpec((tn, d_pad), lambda i: (i, 0)),     # node features tile
                pl.BlockSpec((d_pad, h_pad), lambda i: (0, 0),
                             pipeline_mode=single_buf),          # W1^T
                pl.BlockSpec((1, h_pad), lambda i: (0, 0),
                             pipeline_mode=single_buf),          # b1
                pl.BlockSpec((h_pad, c_pad), lambda i: (0, 0),
                             pipeline_mode=single_buf),          # W2^T
                pl.BlockSpec((1, c_pad), lambda i: (0, 0),
                             pipeline_mode=single_buf),          # b2
            ],
            out_specs=pl.BlockSpec((g_pad, c_pad), lambda i: (0, 0)),
            scratch_shapes=[
                pltpu.VMEM((g_pad, h_pad), jnp.float32),   # pooled accumulator
                pltpu.VMEM((g_pad, tn), jnp.int32),        # hoisted graph-id iota
            ],
        ),
        compiler_params=pltpu.CompilerParams(
            dimension_semantics=("arbitrary",),
            vmem_limit_bytes=vmem_limit,
        ),
        cost_estimate=cost,
    )(batch_p, x_p, w1_p, b1_p, w2_p, b2_p)

    # Slice the lane-dense padded block back to the logical shape.
    return out_padded[:num_graphs, :c]


def reference(inputs, batch, w1, b1, w2, b2, num_graphs):
    h = jnp.maximum(inputs @ w1 + b1, 0.0)
    pooled = jax.ops.segment_sum(h, batch, num_segments=num_graphs)
    return pooled @ w2 + b2


if __name__ == "__main__":
    key = jax.random.PRNGKey(0)
    k_x, k_w1, k_b1, k_w2, k_b2 = jax.random.split(key, 5)

    # Small shapes consistent with the module.
    num_nodes = 16
    node_embedding_dim = 32
    hidden_dim = 32
    num_classes = 8
    num_graphs = 2

    inputs = jax.random.normal(k_x, (num_nodes, node_embedding_dim), dtype=jnp.float32)
    # nodes 0..7 -> graph 0, nodes 8..15 -> graph 1
    batch = jnp.concatenate(
        [jnp.zeros((num_nodes // 2,), jnp.int32), jnp.ones((num_nodes // 2,), jnp.int32)]
    )

    # Deterministic parameter init (Linear weights stored pre-transposed: in_dim x out_dim).
    w1 = jax.random.normal(k_w1, (node_embedding_dim, hidden_dim), dtype=jnp.float32) * 0.1
    b1 = jax.random.normal(k_b1, (hidden_dim,), dtype=jnp.float32) * 0.1
    w2 = jax.random.normal(k_w2, (hidden_dim, num_classes), dtype=jnp.float32) * 0.1
    b2 = jax.random.normal(k_b2, (num_classes,), dtype=jnp.float32) * 0.1

    ref = reference(inputs, batch, w1, b1, w2, b2, num_graphs)

    # Exact (f32) path.
    out = graph_classification_output(inputs, batch, w1, b1, w2, b2, num_graphs,
                                      use_bf16=False)
    out = jax.block_until_ready(out)
    assert out.shape == (num_graphs, num_classes)
    assert jnp.allclose(out, ref, atol=1e-4, rtol=1e-4)

    # bf16 MXU path (v6e/v7x fast path) -- looser tolerance by construction.
    out_bf16 = graph_classification_output(inputs, batch, w1, b1, w2, b2, num_graphs,
                                           use_bf16=True)
    out_bf16 = jax.block_until_ready(out_bf16)
    assert out_bf16.shape == (num_graphs, num_classes)
    assert jnp.allclose(out_bf16, ref, atol=5e-2, rtol=5e-2)

    print("KERNEL_OK")
</pallas_src>

<mosaic_0001>
module attributes {stable_mosaic.version = 11 : i64} {
  func.func @_graph_cls_kernel(%arg0: i32, %arg1: memref<1x128xi32, #tpu.memory_space<vmem>>, %arg2: memref<128x128xf32, #tpu.memory_space<vmem>>, %arg3: memref<128x128xf32, #tpu.memory_space<vmem>>, %arg4: memref<1x128xf32, #tpu.memory_space<vmem>>, %arg5: memref<128x128xf32, #tpu.memory_space<vmem>>, %arg6: memref<1x128xf32, #tpu.memory_space<vmem>>, %arg7: memref<8x128xf32, #tpu.memory_space<vmem>>, %arg8: memref<8x128xf32, #tpu.memory_space<vmem>>, %arg9: memref<8x128xi32, #tpu.memory_space<vmem>>) attributes {dimension_semantics = [#tpu.dimension_semantics<arbitrary>], iteration_bounds = array<i64: 1>, scalar_prefetch = 0 : i64, scratch_operands = 2 : i64, tpu.core_type = #tpu.core_type<tc>, window_params = [{transform_indices = @transform_0, window_bounds = array<i64: 1, 128>}, {transform_indices = @transform_1, window_bounds = array<i64: 128, 128>}, {pipeline_mode = #tpu.pipeline_mode<synchronous>, transform_indices = @transform_2, window_bounds = array<i64: 128, 128>}, {pipeline_mode = #tpu.pipeline_mode<synchronous>, transform_indices = @transform_3, window_bounds = array<i64: 1, 128>}, {pipeline_mode = #tpu.pipeline_mode<synchronous>, transform_indices = @transform_4, window_bounds = array<i64: 128, 128>}, {pipeline_mode = #tpu.pipeline_mode<synchronous>, transform_indices = @transform_5, window_bounds = array<i64: 1, 128>}, {pipeline_mode = #tpu.pipeline_mode<synchronous>, transform_indices = @transform_6, window_bounds = array<i64: 8, 128>}]} {
    %c0_i32 = arith.constant 0 : i32
    %0 = arith.cmpi eq, %arg0, %c0_i32 : i32
    %1 = arith.extui %0 : i1 to i32
    %c0_i32_0 = arith.constant 0 : i32
    %2 = arith.cmpi ne, %1, %c0_i32_0 : i32
    scf.if %2 {
      %cst_18 = arith.constant 0.000000e+00 : f32
      %24 = vector.broadcast %cst_18 : f32 to vector<8x128xf32>
      %c0_19 = arith.constant 0 : index
      %c0_20 = arith.constant 0 : index
      %25 = vector.load %arg8[%c0_19, %c0_20] : memref<8x128xf32, #tpu.memory_space<vmem>>, vector<8x128xf32>
      tpu.vector_store %arg8[%c0_19, %c0_20], %24 {strides = array<i32>} : memref<8x128xf32, #tpu.memory_space<vmem>>, vector<8x128xf32>,
      %26 = tpu.iota {dimensions = array<i32: 0>} : vector<8x128xi32>
      %c0_21 = arith.constant 0 : index
      %c0_22 = arith.constant 0 : index
      %27 = vector.load %arg9[%c0_21, %c0_22] : memref<8x128xi32, #tpu.memory_space<vmem>>, vector<8x128xi32>
      tpu.vector_store %arg9[%c0_21, %c0_22], %26 {strides = array<i32>} : memref<8x128xi32, #tpu.memory_space<vmem>>, vector<8x128xi32>,
    } else {
    }
    %c0 = arith.constant 0 : index
    %c0_1 = arith.constant 0 : index
    %3 = vector.load %arg2[%c0, %c0_1] : memref<128x128xf32, #tpu.memory_space<vmem>>, vector<128x128xf32>
    %c0_2 = arith.constant 0 : index
    %c0_3 = arith.constant 0 : index
    %4 = vector.load %arg3[%c0_2, %c0_3] : memref<128x128xf32, #tpu.memory_space<vmem>>, vector<128x128xf32>
    %cst = arith.constant dense<0.000000e+00> : vector<128x128xf32>
    %5 = tpu.matmul %3, %4, %cst {dimension_numbers = #tpu.dot_dimension_numbers<[1], [0], [0], [1], [0, 0, 1, 1], [], []>} : vector<128x128xf32>, vector<128x128xf32>, vector<128x128xf32> -> vector<128x128xf32>
    %c0_4 = arith.constant 0 : index
    %c0_5 = arith.constant 0 : index
    %6 = vector.load %arg4[%c0_4, %c0_5] : memref<1x128xf32, #tpu.memory_space<vmem>>, vector<1x128xf32>
    %7 = vector.broadcast %6 : vector<1x128xf32> to vector<128x128xf32>
    %8 = arith.addf %5, %7 : vector<128x128xf32>
    %cst_6 = arith.constant 0.000000e+00 : f32
    %9 = vector.broadcast %cst_6 : f32 to vector<128x128xf32>
    %10 = arith.maximumf %8, %9 : vector<128x128xf32>
    %c0_7 = arith.constant 0 : index
    %c0_8 = arith.constant 0 : index
    %11 = vector.load %arg1[%c0_7, %c0_8] : memref<1x128xi32, #tpu.memory_space<vmem>>, vector<1x128xi32>
    %c0_9 = arith.constant 0 : index
    %c0_10 = arith.constant 0 : index
    %12 = vector.load %arg9[%c0_9, %c0_10] : memref<8x128xi32, #tpu.memory_space<vmem>>, vector<8x128xi32>
    %13 = vector.broadcast %11 : vector<1x128xi32> to vector<8x128xi32>
    %14 = arith.cmpi eq, %12, %13 : vector<8x128xi32>
    %15 = arith.extui %14 : vector<8x128xi1> to vector<8x128xi32>
    %16 = arith.sitofp %15 : vector<8x128xi32> to vector<8x128xf32>
    %c0_11 = arith.constant 0 : index
    %c0_12 = arith.constant 0 : index
    %17 = vector.load %arg8[%c0_11, %c0_12] : memref<8x128xf32, #tpu.memory_space<vmem>>, vector<8x128xf32>
    %cst_13 = arith.constant dense<0.000000e+00> : vector<8x128xf32>
    %18 = tpu.matmul %16, %10, %cst_13 {dimension_numbers = #tpu.dot_dimension_numbers<[1], [0], [0], [1], [0, 0, 1, 1], [], []>} : vector<8x128xf32>, vector<128x128xf32>, vector<8x128xf32> -> vector<8x128xf32>
    %19 = arith.addf %17, %18 : vector<8x128xf32>
    %c0_14 = arith.constant 0 : index
    %c0_15 = arith.constant 0 : index
    %20 = vector.load %arg8[%c0_14, %c0_15] : memref<8x128xf32, #tpu.memory_space<vmem>>, vector<8x128xf32>
    tpu.vector_store %arg8[%c0_14, %c0_15], %19 {strides = array<i32>} : memref<8x128xf32, #tpu.memory_space<vmem>>, vector<8x128xf32>,
    %c0_i32_16 = arith.constant 0 : i32
    %21 = arith.cmpi eq, %arg0, %c0_i32_16 : i32
    %22 = arith.extui %21 : i1 to i32
    %c0_i32_17 = arith.constant 0 : i32
    %23 = arith.cmpi ne, %22, %c0_i32_17 : i32
    scf.if %23 {
      %c0_18 = arith.constant 0 : index
      %c0_19 = arith.constant 0 : index
      %24 = vector.load %arg8[%c0_18, %c0_19] : memref<8x128xf32, #tpu.memory_space<vmem>>, vector<8x128xf32>
      %c0_20 = arith.constant 0 : index
      %c0_21 = arith.constant 0 : index
      %25 = vector.load %arg5[%c0_20, %c0_21] : memref<128x128xf32, #tpu.memory_space<vmem>>, vector<128x128xf32>
      %cst_22 = arith.constant dense<0.000000e+00> : vector<8x128xf32>
      %26 = tpu.matmul %24, %25, %cst_22 {dimension_numbers = #tpu.dot_dimension_numbers<[1], [0], [0], [1], [0, 0, 1, 1], [], []>} : vector<8x128xf32>, vector<128x128xf32>, vector<8x128xf32> -> vector<8x128xf32>
      %c0_23 = arith.constant 0 : index
      %c0_24 = arith.constant 0 : index
      %27 = vector.load %arg6[%c0_23, %c0_24] : memref<1x128xf32, #tpu.memory_space<vmem>>, vector<1x128xf32>
      %28 = vector.broadcast %27 : vector<1x128xf32> to vector<8x128xf32>
      %29 = arith.addf %26, %28 : vector<8x128xf32>
      %c0_25 = arith.constant 0 : index
      %c0_26 = arith.constant 0 : index
      %30 = vector.load %arg7[%c0_25, %c0_26] : memref<8x128xf32, #tpu.memory_space<vmem>>, vector<8x128xf32>
      tpu.vector_store %arg7[%c0_25, %c0_26], %29 {strides = array<i32>} : memref<8x128xf32, #tpu.memory_space<vmem>>, vector<8x128xf32>,
    } else {
    }
    return
  }
  func.func @transform_0(%arg0: i32) -> (i32, i32) {
    %c0_i32 = arith.constant 0 : i32
    %c0_i32_0 = arith.constant 0 : i32
    return %c0_i32, %arg0 : i32, i32
  }
  func.func @transform_1(%arg0: i32) -> (i32, i32) {
    %c0_i32 = arith.constant 0 : i32
    %c0_i32_0 = arith.constant 0 : i32
    return %arg0, %c0_i32 : i32, i32
  }
  func.func @transform_2(%arg0: i32) -> (i32, i32) {
    %c0_i32 = arith.constant 0 : i32
    %c0_i32_0 = arith.constant 0 : i32
    %c0_i32_1 = arith.constant 0 : i32
    return %c0_i32, %c0_i32_0 : i32, i32
  }
  func.func @transform_3(%arg0: i32) -> (i32, i32) {
    %c0_i32 = arith.constant 0 : i32
    %c0_i32_0 = arith.constant 0 : i32
    %c0_i32_1 = arith.constant 0 : i32
    return %c0_i32, %c0_i32_0 : i32, i32
  }
  func.func @transform_4(%arg0: i32) -> (i32, i32) {
    %c0_i32 = arith.constant 0 : i32
    %c0_i32_0 = arith.constant 0 : i32
    %c0_i32_1 = arith.constant 0 : i32
    return %c0_i32, %c0_i32_0 : i32, i32
  }
  func.func @transform_5(%arg0: i32) -> (i32, i32) {
    %c0_i32 = arith.constant 0 : i32
    %c0_i32_0 = arith.constant 0 : i32
    %c0_i32_1 = arith.constant 0 : i32
    return %c0_i32, %c0_i32_0 : i32, i32
  }
  func.func @transform_6(%arg0: i32) -> (i32, i32) {
    %c0_i32 = arith.constant 0 : i32
    %c0_i32_0 = arith.constant 0 : i32
    %c0_i32_1 = arith.constant 0 : i32
    return %c0_i32, %c0_i32_0 : i32, i32
  }
}

</mosaic_0001>

<bundles_post_ra>
// kernel: graph_classification_output.1
= control target key start
LH: loop header
LB: loop body
LE: loop exit
PB: predicated region body
PF: predicated region fallthrough
CT: control target
= control target key end

     0   :  { %v696_v40 = vmov 0.0|0.0   ;;  %vm697_vm0 = vmmov 0   ;;  %v698_v41 = vmov 0.0   ;;  %s925_s2 = inlined_call_operand.vmem [shape: f32[128,128], index: 2, kind: input, shape index: {}]   ;;  %s926_s1 = inlined_call_operand.vmem [shape: f32[128,128], index: 1, kind: input, shape index: {}]   ;;  %s927_s4 = inlined_call_operand.vmem [shape: f32[128,128], index: 4, kind: input, shape index: {}]   ;;  %s928_s3 = inlined_call_operand.vmem [shape: f32[1,128], index: 3, kind: input, shape index: {}]   ;;  %s929_s0 = inlined_call_operand.vmem [shape: s32[1,128], index: 0, kind: input, shape index: {}]   ;;  %s930_s5 = inlined_call_operand.vmem [shape: f32[1,128], index: 5, kind: input, shape index: {}]   ;;  %s931_s6 = inlined_call_operand.vmem [shape: f32[8,128], index: 6, kind: output, shape index: {}]  }
   0x1   :  { %v47_v0 = vld [vmem:[%s925_s2] sm:$0xff]  ;;  %v48_v1 = vld [vmem:[%s925_s2 + $0x8] sm:$0xff]  ;;  %v49_v2 = vld [vmem:[%s925_s2 + $0x10] sm:$0xff]  ;;  %644 = vmatprep.subr.bf16.mxu1 %v696_v40  ;;  %574 = vmatprep.mubr.msk.f32.mxu1 %vm697_vm0, %v698_v41 }
   0x2   :  { %v612_v3 = vpack.c.bf16 %v48_v1, %v47_v0  ;;  %v50_v4 = vld [vmem:[%s925_s2 + $0x18] sm:$0xff]  ;;  %v51_v6 = vld [vmem:[%s925_s2 + $0x20] sm:$0xff]  ;;  %v52_v7 = vld [vmem:[%s925_s2 + $0x28] sm:$0xff] }
   0x3   :  { %v616_v5 = vpack.c.bf16 %v50_v4, %v49_v2  ;;  %v620_v8 = vpack.c.bf16 %v52_v7, %v51_v6  ;;  %v31_v9 = vld [vmem:[%s926_s1] sm:$0xff]  ;;  %v53_v10 = vld [vmem:[%s925_s2 + $0x30] sm:$0xff]  ;;  %v54_v11 = vld [vmem:[%s925_s2 + $0x38] sm:$0xff] }
   0x4   :  { %613 = vmatprep.subr.bf16.mxu0 %v612_v3  ;;  %518 = vmatprep.mubr.f32.mxu0 %v31_v9  ;;  %v624_v12 = vpack.c.bf16 %v54_v11, %v53_v10  ;;  %v55_v13 = vld [vmem:[%s925_s2 + $0x40] sm:$0xff]  ;;  %v56_v14 = vld [vmem:[%s925_s2 + $0x48] sm:$0xff]  ;;  %v57_v16 = vld [vmem:[%s925_s2 + $0x50] sm:$0xff] }
   0x5   :  { %615 = vmatpush3.bf16.msra.mxu0 %v612_v3  ;;  %v628_v15 = vpack.c.bf16 %v56_v14, %v55_v13  ;;  %v58_v17 = vld [vmem:[%s925_s2 + $0x58] sm:$0xff]  ;;  %v59_v19 = vld [vmem:[%s925_s2 + $0x60] sm:$0xff]  ;;  %v60_v20 = vld [vmem:[%s925_s2 + $0x68] sm:$0xff] }
   0x6   :  { %617 = vmatprep.subr.bf16.mxu0 %v616_v5  ;;  %v632_v18 = vpack.c.bf16 %v58_v17, %v57_v16  ;;  %v636_v21 = vpack.c.bf16 %v60_v20, %v59_v19  ;;  %v61_v22 = vld [vmem:[%s925_s2 + $0x70] sm:$0xff]  ;;  %v62_v23 = vld [vmem:[%s925_s2 + $0x78] sm:$0xff]  ;;  %v32_v25 = vld [vmem:[%s926_s1 + $0x8] sm:$0xff] }
   0x7   :  { %v640_v24 = vpack.c.bf16 %v62_v23, %v61_v22  ;;  %v33_v26 = vld [vmem:[%s926_s1 + $0x10] sm:$0xff]  ;;  %v34_v27 = vld [vmem:[%s926_s1 + $0x18] sm:$0xff]  ;;  %v35_v28 = vld [vmem:[%s926_s1 + $0x20] sm:$0xff] }
   0x8   :  { %v36_v29 = vld [vmem:[%s926_s1 + $0x28] sm:$0xff]  ;;  %v37_v30 = vld [vmem:[%s926_s1 + $0x30] sm:$0xff]  ;;  %v38_v31 = vld [vmem:[%s926_s1 + $0x38] sm:$0xff] }
   0x9   :  { %619 = vmatpush3.bf16.msra.mxu0 %v616_v5  ;;  %v39_v32 = vld [vmem:[%s926_s1 + $0x40] sm:$0xff]  ;;  %v40_v33 = vld [vmem:[%s926_s1 + $0x48] sm:$0xff]  ;;  %v41_v34 = vld [vmem:[%s926_s1 + $0x50] sm:$0xff] }
   0xa   :  { %621 = vmatprep.subr.bf16.mxu0 %v620_v8  ;;  %v42_v35 = vld [vmem:[%s926_s1 + $0x58] sm:$0xff]  ;;  %v43_v36 = vld [vmem:[%s926_s1 + $0x60] sm:$0xff]  ;;  %v44_v37 = vld [vmem:[%s926_s1 + $0x68] sm:$0xff] }
   0xb   :  { %v45_v38 = vld [vmem:[%s926_s1 + $0x70] sm:$0xff]  ;;  %v46_v39 = vld [vmem:[%s926_s1 + $0x78] sm:$0xff]  ;;  %v317_v42 = vld [vmem:[%s927_s4] sm:$0xff] }
   0xc   :  { %v318_v43 = vld [vmem:[%s927_s4 + $0x8] sm:$0xff]  ;;  %v319_v44 = vld [vmem:[%s927_s4 + $0x10] sm:$0xff]  ;;  %v320_v46 = vld [vmem:[%s927_s4 + $0x18] sm:$0xff] }
   0xd   :  { %623 = vmatpush3.bf16.msra.mxu0 %v620_v8  ;;  %v669_v45 = vpack.c.bf16 %v318_v43, %v317_v42  ;;  %v672_v47 = vpack.c.bf16 %v320_v46, %v319_v44  ;;  %v321_v48 = vld [vmem:[%s927_s4 + $0x20] sm:$0xff]  ;;  %v322_v49 = vld [vmem:[%s927_s4 + $0x28] sm:$0xff]  ;;  %v323_v51 = vld [vmem:[%s927_s4 + $0x30] sm:$0xff] }
   0xe   :  { %625 = vmatprep.subr.bf16.mxu0 %v624_v12  ;;  %v675_v50 = vpack.c.bf16 %v322_v49, %v321_v48  ;;  %v324_v52 = vld [vmem:[%s927_s4 + $0x38] sm:$0xff]  ;;  %v325_v54 = vld [vmem:[%s927_s4 + $0x40] sm:$0xff]  ;;  %v326_v55 = vld [vmem:[%s927_s4 + $0x48] sm:$0xff] }
   0xf   :  { %v678_v53 = vpack.c.bf16 %v324_v52, %v323_v51  ;;  %v681_v56 = vpack.c.bf16 %v326_v55, %v325_v54  ;;  %v327_v57 = vld [vmem:[%s927_s4 + $0x50] sm:$0xff]  ;;  %v328_v58 = vld [vmem:[%s927_s4 + $0x58] sm:$0xff]  ;;  %v329_v60 = vld [vmem:[%s927_s4 + $0x60] sm:$0xff] }
  0x10   :  { %v684_v59 = vpack.c.bf16 %v328_v58, %v327_v57  ;;  %v330_v61 = vld [vmem:[%s927_s4 + $0x68] sm:$0xff]  ;;  %v331_v63 = vld [vmem:[%s927_s4 + $0x70] sm:$0xff]  ;;  %v332_v0 = vld [vmem:[%s927_s4 + $0x78] sm:$0xff] }
  0x11   :  { %627 = vmatpush3.bf16.msra.mxu0 %v624_v12  ;;  %v687_v62 = vpack.c.bf16 %v330_v61, %v329_v60  ;;  %v690_v1 = vpack.c.bf16 %v332_v0, %v331_v63  ;;  %v891_v2 = vld [vmem:[%s928_s3] ss:$0 sm:$0xff]  ;;  %v699_v63 = vmov 1.0  }
  0x12   :  { %629 = vmatprep.subr.bf16.mxu0 %v628_v15  ;;  %v416_v61 = vld [vmem:[%s929_s0] ss:$0 sm:$0xff] }
  0x15   :  { %631 = vmatpush3.bf16.msra.mxu0 %v628_v15 }
  0x16   :  { %633 = vmatprep.subr.bf16.mxu0 %v632_v18 }
  0x19   :  { %635 = vmatpush3.bf16.msra.mxu0 %v632_v18 }
  0x1a   :  { %637 = vmatprep.subr.bf16.mxu0 %v636_v21 }
  0x1d   :  { %639 = vmatpush3.bf16.msra.mxu0 %v636_v21 }
  0x1e   :  { %641 = vmatprep.subr.bf16.mxu0 %v640_v24 }
  0x21   :  { %643 = vmatpush3.bf16.msra.mxu0 %v640_v24 }
  0x22   :  { %668 = vmatprep.subr.bf16.mxu0 %v696_v40 }
  0x24   :  { %519 = vmatmul.mubr.f32.vlgmr.msra.gmra.mrb[0].mxu0 %v32_v25 }
  0x25   :  { %521 = vmatprep.mubr.f32.mxu0 %v33_v26  ;;  %670 = vmatpush3.bf16.msra.mxu0 %v669_v45 }
  0x26   :  { %671 = vmatprep.subr.bf16.mxu0 %v696_v40 }
  0x28   :  { %522 = vmatmul.mubr.f32.gmra.mrb[2].mxu0 %v34_v27 }
  0x29   :  { %524 = vmatprep.mubr.f32.mxu0 %v35_v28  ;;  %673 = vmatpush3.bf16.msra.mxu0 %v672_v47 }
  0x2a   :  { %674 = vmatprep.subr.bf16.mxu0 %v696_v40 }
  0x2c   :  { %525 = vmatmul.mubr.f32.gmra.mrb[4].mxu0 %v36_v29 }
  0x2d   :  { %527 = vmatprep.mubr.f32.mxu0 %v37_v30  ;;  %676 = vmatpush3.bf16.msra.mxu0 %v675_v50 }
  0x2e   :  { %677 = vmatprep.subr.bf16.mxu0 %v696_v40 }
  0x30   :  { %528 = vmatmul.mubr.f32.gmra.mrb[6].mxu0 %v38_v31 }
  0x31   :  { %530 = vmatprep.mubr.f32.mxu0 %v39_v32  ;;  %679 = vmatpush3.bf16.msra.mxu0 %v678_v53  ;;  %v28_v53 = vlaneseq }
  0x32   :  { %680 = vmatprep.subr.bf16.mxu0 %v696_v40 }
  0x33   :  { %v29_v60 = vshrl.u32 %v28_v53, 7 }
  0x34   :  { %531 = vmatmul.mubr.f32.gmra.mrb[8].mxu0 %v40_v33 }
  0x35   :  { %533 = vmatprep.mubr.f32.mxu0 %v41_v34  ;;  %682 = vmatpush3.bf16.msra.mxu0 %v681_v56  ;;  %vm237_vm1 = vcmp.eq.s32.totalorder %v29_v60, %v416_v61 }
  0x36   :  { %683 = vmatprep.subr.bf16.mxu0 %v696_v40 }
  0x38   :  { %534 = vmatmul.mubr.f32.gmra.mrb[10].mxu0 %v42_v35 }
  0x39   :  { %536 = vmatprep.mubr.f32.mxu0 %v43_v36  ;;  %685 = vmatpush3.bf16.msra.mxu0 %v684_v59 }
  0x3a   :  { %686 = vmatprep.subr.bf16.mxu0 %v696_v40 }
  0x3c   :  { %537 = vmatmul.mubr.f32.gmra.mrb[12].mxu0 %v44_v37 }
  0x3d   :  { %539 = vmatprep.mubr.f32.mxu0 %v45_v38  ;;  %688 = vmatpush3.bf16.msra.mxu0 %v687_v62 }
  0x3e   :  { %689 = vmatprep.subr.bf16.mxu0 %v696_v40 }
  0x40   :  { %540 = vmatmul.mubr.f32.gmra.mrb[14].mxu0 %v46_v39 }
  0x41   :  { %609 = vmatprep.mubr.msk.f32.mxu0 %vm697_vm0, %v698_v41  ;;  %691 = vmatpush3.bf16.msra.mxu0 %v690_v1 }
  0xf7   :  { %v520_v3 = vpop.f32.mrb[0].mxu0 }
  0xf8   :  { %v142_v4 = vadd.f32 %v520_v3, %v891_v2  ;;  %v136_v5 = vpop.f32.mrb[1].mxu0 }
  0xf9   :  { %v137_v6 = vadd.f32 %v891_v2, %v136_v5 }
  0xfa   :  { %v216_v7 = vmax.f32 %v142_v4, 0.0 }
  0xfb   :  { %v215_v8 = vmax.f32 %v137_v6, 0.0  ;;  %v523_v9 = vpop.f32.mrb[2].mxu0 }
  0xfc   :  { %v152_v10 = vadd.f32 %v523_v9, %v891_v2  ;;  %v146_v11 = vpop.f32.mrb[3].mxu0 }
  0xfd   :  { %v147_v12 = vadd.f32 %v891_v2, %v146_v11  ;;  %v645_v13 = vpack.c.bf16 %v216_v7, %v215_v8 }
  0xfe   :  { %v218_v14 = vmax.f32 %v152_v10, 0.0 }
  0xff   :  { %v217_v15 = vmax.f32 %v147_v12, 0.0  ;;  %v526_v16 = vpop.f32.mrb[4].mxu0  ;;  %646 = vmatpush3.bf16.msra.mxu1 %v645_v13 }
 0x100   :  { %v162_v17 = vadd.f32 %v526_v16, %v891_v2  ;;  %v156_v18 = vpop.f32.mrb[5].mxu0  ;;  %647 = vmatprep.subr.bf16.mxu1 %v696_v40 }
 0x101   :  { %v648_v19 = vpack.c.bf16 %v218_v14, %v217_v15  ;;  %v157_v20 = vadd.f32 %v891_v2, %v156_v18 }
 0x102   :  { %v220_v21 = vmax.f32 %v162_v17, 0.0 }
 0x103   :  { %v219_v22 = vmax.f32 %v157_v20, 0.0  ;;  %v529_v23 = vpop.f32.mrb[6].mxu0  ;;  %649 = vmatpush3.bf16.msra.mxu1 %v648_v19 }
 0x104   :  { %v172_v24 = vadd.f32 %v529_v23, %v891_v2  ;;  %v166_v25 = vpop.f32.mrb[7].mxu0  ;;  %650 = vmatprep.subr.bf16.mxu1 %v696_v40 }
 0x105   :  { %v651_v26 = vpack.c.bf16 %v220_v21, %v219_v22  ;;  %v167_v27 = vadd.f32 %v891_v2, %v166_v25 }
 0x106   :  { %v222_v28 = vmax.f32 %v172_v24, 0.0 }
 0x107   :  { %v221_v29 = vmax.f32 %v167_v27, 0.0  ;;  %v532_v30 = vpop.f32.mrb[8].mxu0  ;;  %652 = vmatpush3.bf16.msra.mxu1 %v651_v26 }
 0x108   :  { %v182_v31 = vadd.f32 %v532_v30, %v891_v2  ;;  %v176_v32 = vpop.f32.mrb[9].mxu0  ;;  %653 = vmatprep.subr.bf16.mxu1 %v696_v40 }
 0x109   :  { %v654_v33 = vpack.c.bf16 %v222_v28, %v221_v29  ;;  %v177_v34 = vadd.f32 %v891_v2, %v176_v32 }
 0x10a   :  { %v224_v35 = vmax.f32 %v182_v31, 0.0 }
 0x10b   :  { %v223_v36 = vmax.f32 %v177_v34, 0.0  ;;  %v535_v37 = vpop.f32.mrb[10].mxu0  ;;  %655 = vmatpush3.bf16.msra.mxu1 %v654_v33 }
 0x10c   :  { %v192_v38 = vadd.f32 %v535_v37, %v891_v2  ;;  %v186_v39 = vpop.f32.mrb[11].mxu0  ;;  %656 = vmatprep.subr.bf16.mxu1 %v696_v40 }
 0x10d   :  { %v657_v41 = vpack.c.bf16 %v224_v35, %v223_v36  ;;  %v187_v42 = vadd.f32 %v891_v2, %v186_v39 }
 0x10e   :  { %v226_v43 = vmax.f32 %v192_v38, 0.0 }
 0x10f   :  { %v225_v44 = vmax.f32 %v187_v42, 0.0  ;;  %v538_v45 = vpop.f32.mrb[12].mxu0  ;;  %658 = vmatpush3.bf16.msra.mxu1 %v657_v41 }
 0x110   :  { %v202_v46 = vadd.f32 %v538_v45, %v891_v2  ;;  %v196_v47 = vpop.f32.mrb[13].mxu0  ;;  %659 = vmatprep.subr.bf16.mxu1 %v696_v40 }
 0x111   :  { %v660_v48 = vpack.c.bf16 %v226_v43, %v225_v44  ;;  %v197_v49 = vadd.f32 %v891_v2, %v196_v47 }
 0x112   :  { %v228_v50 = vmax.f32 %v202_v46, 0.0 }
 0x113   :  { %v227_v51 = vmax.f32 %v197_v49, 0.0  ;;  %v541_v52 = vpop.f32.mrb[14].mxu0  ;;  %661 = vmatpush3.bf16.msra.mxu1 %v660_v48 }
 0x114   :  { %v212_v54 = vadd.f32 %v541_v52, %v891_v2  ;;  %v206_v55 = vpop.f32.mrb[15].mxu0  ;;  %662 = vmatprep.subr.bf16.mxu1 %v696_v40 }
 0x115   :  { %v663_v56 = vpack.c.bf16 %v228_v50, %v227_v51  ;;  %v207_v57 = vadd.f32 %v891_v2, %v206_v55  ;;  %v419_v2 = vld [vmem:[%s930_s5] ss:$0 sm:$0xff] }
 0x116   :  { %v230_v58 = vmax.f32 %v212_v54, 0.0 }
 0x117   :  { %v229_v59 = vmax.f32 %v207_v57, 0.0  ;;  %664 = vmatpush3.bf16.msra.mxu1 %v663_v56 }
 0x118   :  { %665 = vmatprep.subr.bf16.mxu1 %v696_v40 }
 0x119   :  { %v666_v62 = vpack.c.bf16 %v230_v58, %v229_v59 }
 0x11b   :  { %667 = vmatpush3.bf16.msra.mxu1 %v666_v62 }
 0x11e   :  { %575 = vmatmul.mubr.msk.f32.vlgmr.msra.gmra.mrb[0].mxu1 %vm237_vm1, %v699_v63 }
 0x1f1   :  { %v307_v0 = vpop.f32.mrb[0].mxu1 }
 0x1f2   :  { %v576_v1 = vpop.f32.mrb[1].mxu1  ;;  %610 = vmatmul.mubr.f32.vlgmr.msra.gmra.mrb[16].mxu0 %v307_v0 }
 0x2c5   :  { %v406_v3 = vpop.f32.mrb[16].mxu0 }
 0x2c6   :  { %v407_v4 = vadd.f32 %v419_v2, %v406_v3  ;;  %v611_v5 = vpop.f32.mrb[17].mxu0 }
 0x2c8   :  { %410 = vst [vmem:[%s931_s6] sm:$0xff] %v407_v4 }

</bundles_post_ra>
